<compile_context>
chip_gen: v7x
topology: tpu7x:2x2x1
jax: 0.10.0
libtpu: 0.0.40
codegen_flags: <defaults>
</compile_context>

<pallas_src>
import functools

import jax
import jax.numpy as jnp
from jax.experimental import pallas as pl
from jax.experimental.pallas import tpu as pltpu


def _cdiv(a, b):
    return -(-a // b)


def _round_up(n, m):
    return ((n + m - 1) // m) * m


# ----------------------------------------------------------------------------
# Kernel
# ----------------------------------------------------------------------------
def _autoencoder_kernel(
    x_ref,
    # encoder params: 3 Linear layers (input -> e0 -> e1 -> hidden)
    ew0, eb0, ew1, eb1, ew2, eb2,
    # fused [predictor (padded to 128 lanes) | decoder layer 0] weight / bias
    dpw, dpb,
    # remaining decoder layers (d0 -> d1 -> input)
    dw1, db1, dw2, db2,
    # outputs
    decoded_ref, predicted_ref,
    *, d0_width, pred_pad,
):
    md = ew0.dtype  # matmul operand dtype (bf16 -> MXU native)

    def dense(h, w_ref, b_ref):
        # MXU matmul with bf16 operands, f32 accumulation; bias add in f32 (VPU).
        return jnp.dot(h, w_ref[...], preferred_element_type=jnp.float32) + b_ref[...]

    def relu_md(v):
        # ReLU in f32 (f32 VPU path exists on all generations), then carry the
        # activation in the matmul dtype to cut vreg/spill pressure at large tb.
        return jnp.maximum(v, 0.0).astype(md)

    x = x_ref[...].astype(md)

    # ---- encoder: Linear + ReLU (x3) ----
    h = relu_md(dense(x, ew0, eb0))
    h = relu_md(dense(h, ew1, eb1))
    encoded = relu_md(dense(h, ew2, eb2))

    # ---- fused predictor + decoder-layer-0 (both consume `encoded`) ----
    # Layout is [predictor(128) | decoder0(d0_width)], so both slices start on a
    # 128-lane vreg boundary: no cross-lane shift, lane-dense predictor store.
    dp = dense(encoded, dpw, dpb)                       # (TB, 128 + d0_width)
    predicted_ref[...] = dp[:, :pred_pad]               # predictor: no activation
    d = relu_md(dp[:, pred_pad:pred_pad + d0_width])

    # ---- rest of decoder: Linear + ReLU, then Linear + Sigmoid ----
    d = relu_md(dense(d, dw1, db1))
    decoded_ref[...] = jax.nn.sigmoid(dense(d, dw2, db2))   # final_act = Sigmoid


# ----------------------------------------------------------------------------
# Wrapper
# ----------------------------------------------------------------------------
@functools.partial(jax.jit, static_argnames=("matmul_dtype", "block_batch"))
def autoencoder_forward(x, params, matmul_dtype=jnp.bfloat16, block_batch=4096):
    """x: [batch, input_size] (f32 or bf16).  params: 14 arrays, W stored [in, out]."""
    (ew0, eb0, ew1, eb1, ew2, eb2,
     dw0, db0, dw1, db1, dw2, db2, pw, pb) = params

    input_size = dw2.shape[1]
    pred_out = pw.shape[1]
    d0_width = dw0.shape[1]
    hidden = pw.shape[0]
    pred_pad = _round_up(pred_out, 128)   # lane-dense predictor width

    # Zero-pad predictor to a full 128-lane group, then fuse with decoder layer 0
    # as [pw_pad | dw0] (both consume `encoded`): one dot, vreg-aligned slices.
    pw_p = jnp.zeros((hidden, pred_pad), pw.dtype).at[:, :pred_out].set(pw)
    pb_p = jnp.zeros((1, pred_pad), pb.dtype).at[:, :pred_out].set(pb)
    dpw = jnp.concatenate([pw_p, dw0], axis=1)
    dpb = jnp.concatenate([pb_p, db0], axis=1)

    # Weights in bf16 for the MXU (halves weight DMA too); biases stay f32.
    md = matmul_dtype
    ew0, ew1, ew2, dpw, dw1, dw2 = (w.astype(md) for w in
                                    (ew0, ew1, ew2, dpw, dw1, dw2))
    eb0, eb1, eb2, dpb, db1, db2 = (b.astype(jnp.float32) for b in
                                    (eb0, eb1, eb2, dpb, db1, db2))

    batch = x.shape[0]

    # Batch tile: as large as possible (per-step overhead dominates at small
    # tiles), a multiple of 8 (sublanes), and sized so that large batches split
    # into an even number of >1 grid steps (feeds both TensorCores on v7x).
    tb = min(block_batch, max(8, _round_up(_cdiv(batch, 2), 8)))
    n_steps = _cdiv(batch, tb)
    if n_steps > 1 and n_steps % 2 == 1:
        tb = min(tb, _round_up(_cdiv(batch, n_steps + 1), 8))   # best-effort even grid
    grid = (_cdiv(batch, tb),)

    # Explicit VMEM budget: 2x-buffered activation streams (x, decoded, padded
    # predictor) + resident params + headroom for intermediates/spills.  Capped
    # below v7x's 64 MiB physical VMEM; floor at the 32 MiB default.
    row_bytes = input_size * x.dtype.itemsize + (input_size + pred_pad) * 4
    vmem_limit = int(min(max(4 * tb * row_bytes + (8 << 20), 32 << 20), 56 << 20))

    def batch_spec(ncols):
        return pl.BlockSpec((tb, ncols), lambda i: (i, 0))

    def const_spec(a):
        # Same block index every grid step -> Pallas keeps it resident in VMEM
        # (no per-step re-DMA).
        return pl.BlockSpec(a.shape, lambda i: (0, 0))

    param_args = (ew0, eb0, ew1, eb1, ew2, eb2, dpw, dpb, dw1, db1, dw2, db2)

    kernel = functools.partial(_autoencoder_kernel,
                               d0_width=d0_width, pred_pad=pred_pad)

    decoded, predicted_p = pl.pallas_call(
        kernel,
        out_shape=(jax.ShapeDtypeStruct((batch, input_size), jnp.float32),
                   jax.ShapeDtypeStruct((batch, pred_pad), jnp.float32)),
        grid=grid,
        in_specs=[batch_spec(input_size)] + [const_spec(a) for a in param_args],
        out_specs=(batch_spec(input_size), batch_spec(pred_pad)),
        compiler_params=pltpu.CompilerParams(
            dimension_semantics=("parallel",),      # shard batch across TCs (v7x)
            vmem_limit_bytes=vmem_limit),
    )(x, *param_args)

    return decoded, predicted_p[:, :pred_out]


# ----------------------------------------------------------------------------
# Deterministic parameter init (mimics nn.Linear default U(-1/sqrt(in), +1/sqrt(in)))
# ----------------------------------------------------------------------------
def init_linear(key, in_f, out_f):
    kw, kb = jax.random.split(key)
    bound = 1.0 / jnp.sqrt(float(in_f))
    W = jax.random.uniform(kw, (in_f, out_f), jnp.float32, -bound, bound)
    b = jax.random.uniform(kb, (1, out_f), jnp.float32, -bound, bound)
    return W, b


def build_params(key, input_size, hidden_size, encoder_layer_sizes, pred_out=6):
    sizes_enc = [input_size] + list(encoder_layer_sizes) + [hidden_size]
    decoder_layer_sizes = list(encoder_layer_sizes)[::-1]
    sizes_dec = [hidden_size] + decoder_layer_sizes + [input_size]

    params = []
    keys = jax.random.split(key, len(sizes_enc) - 1 + len(sizes_dec) - 1 + 1)
    ki = 0
    for i in range(len(sizes_enc) - 1):
        params.extend(init_linear(keys[ki], sizes_enc[i], sizes_enc[i + 1])); ki += 1
    for i in range(len(sizes_dec) - 1):
        params.extend(init_linear(keys[ki], sizes_dec[i], sizes_dec[i + 1])); ki += 1
    params.extend(init_linear(keys[ki], hidden_size, pred_out))
    return params


# ----------------------------------------------------------------------------
# Pure-JAX reference (mirrors the kernel's bf16-matmul / f32-elementwise numerics)
# ----------------------------------------------------------------------------
def reference_forward(x, params, matmul_dtype=jnp.bfloat16):
    (ew0, eb0, ew1, eb1, ew2, eb2,
     dw0, db0, dw1, db1, dw2, db2, pw, pb) = params
    md = matmul_dtype
    dense = lambda h, w, b: jnp.dot(h.astype(md), w.astype(md),
                                    preferred_element_type=jnp.float32) + b
    relu = lambda v: jnp.maximum(v, 0.0)
    h = relu(dense(x, ew0, eb0))
    h = relu(dense(h, ew1, eb1))
    enc = relu(dense(h, ew2, eb2))
    d = relu(dense(enc, dw0, db0))
    d = relu(dense(d, dw1, db1))
    dec = jax.nn.sigmoid(dense(d, dw2, db2))
    pred = dense(enc, pw, pb)
    return dec, pred


# ----------------------------------------------------------------------------
if __name__ == "__main__":
    # Module-consistent shapes: input_size=64, encoder_layer_sizes=[48, 32],
    # hidden_size=16, predictor output = 6.
    input_size = 64
    hidden_size = 16
    encoder_layer_sizes = [48, 32]

    key = jax.random.PRNGKey(0)
    kx, kx2, kp = jax.random.split(key, 3)
    params = build_params(kp, input_size, hidden_size, encoder_layer_sizes)

    # --- small batch: single grid step ---
    x = jax.random.normal(kx, (8, input_size), jnp.float32)
    decoded, predicted = jax.block_until_ready(autoencoder_forward(x, params))
    dec_ref, pred_ref = reference_forward(x, params)
    assert decoded.shape == (8, input_size)
    assert predicted.shape == (8, 6)
    assert jnp.allclose(decoded, dec_ref, atol=1e-3, rtol=1e-3)
    assert jnp.allclose(predicted, pred_ref, atol=1e-3, rtol=1e-3)

    # --- non-multiple batch: two grid steps, partial final block (no wrapper pad) ---
    x2 = jax.random.normal(kx2, (300, input_size), jnp.float32)
    decoded2, predicted2 = jax.block_until_ready(autoencoder_forward(x2, params))
    dec2_ref, pred2_ref = reference_forward(x2, params)
    assert decoded2.shape == (300, input_size)
    assert predicted2.shape == (300, 6)
    assert jnp.allclose(decoded2, dec2_ref, atol=1e-3, rtol=1e-3)
    assert jnp.allclose(predicted2, pred2_ref, atol=1e-3, rtol=1e-3)

    print("KERNEL_OK")
</pallas_src>

<mosaic_0001>
module attributes {stable_mosaic.version = 11 : i64} {
  func.func @_autoencoder_kernel(%arg0: i32, %arg1: memref<8x64xf32, #tpu.memory_space<vmem>>, %arg2: memref<64x48xbf16, #tpu.memory_space<vmem>>, %arg3: memref<1x48xf32, #tpu.memory_space<vmem>>, %arg4: memref<48x32xbf16, #tpu.memory_space<vmem>>, %arg5: memref<1x32xf32, #tpu.memory_space<vmem>>, %arg6: memref<32x16xbf16, #tpu.memory_space<vmem>>, %arg7: memref<1x16xf32, #tpu.memory_space<vmem>>, %arg8: memref<16x160xbf16, #tpu.memory_space<vmem>>, %arg9: memref<1x160xf32, #tpu.memory_space<vmem>>, %arg10: memref<32x48xbf16, #tpu.memory_space<vmem>>, %arg11: memref<1x48xf32, #tpu.memory_space<vmem>>, %arg12: memref<48x64xbf16, #tpu.memory_space<vmem>>, %arg13: memref<1x64xf32, #tpu.memory_space<vmem>>, %arg14: memref<8x64xf32, #tpu.memory_space<vmem>>, %arg15: memref<8x128xf32, #tpu.memory_space<vmem>>) attributes {dimension_semantics = [#tpu.dimension_semantics<parallel>], iteration_bounds = array<i64: 1>, scalar_prefetch = 0 : i64, scratch_operands = 0 : i64, tpu.core_type = #tpu.core_type<tc>, window_params = [{transform_indices = @transform_0, window_bounds = array<i64: 8, 64>}, {pipeline_mode = #tpu.pipeline_mode<synchronous>, transform_indices = @transform_1, window_bounds = array<i64: 64, 48>}, {pipeline_mode = #tpu.pipeline_mode<synchronous>, transform_indices = @transform_2, window_bounds = array<i64: 1, 48>}, {pipeline_mode = #tpu.pipeline_mode<synchronous>, transform_indices = @transform_3, window_bounds = array<i64: 48, 32>}, {pipeline_mode = #tpu.pipeline_mode<synchronous>, transform_indices = @transform_4, window_bounds = array<i64: 1, 32>}, {pipeline_mode = #tpu.pipeline_mode<synchronous>, transform_indices = @transform_5, window_bounds = array<i64: 32, 16>}, {pipeline_mode = #tpu.pipeline_mode<synchronous>, transform_indices = @transform_6, window_bounds = array<i64: 1, 16>}, {pipeline_mode = #tpu.pipeline_mode<synchronous>, transform_indices = @transform_7, window_bounds = array<i64: 16, 160>}, {pipeline_mode = #tpu.pipeline_mode<synchronous>, transform_indices = @transform_8, window_bounds = array<i64: 1, 160>}, {pipeline_mode = #tpu.pipeline_mode<synchronous>, transform_indices = @transform_9, window_bounds = array<i64: 32, 48>}, {pipeline_mode = #tpu.pipeline_mode<synchronous>, transform_indices = @transform_10, window_bounds = array<i64: 1, 48>}, {pipeline_mode = #tpu.pipeline_mode<synchronous>, transform_indices = @transform_11, window_bounds = array<i64: 48, 64>}, {pipeline_mode = #tpu.pipeline_mode<synchronous>, transform_indices = @transform_12, window_bounds = array<i64: 1, 64>}, {transform_indices = @transform_13, window_bounds = array<i64: 8, 64>}, {transform_indices = @transform_14, window_bounds = array<i64: 8, 128>}]} {
    %c0 = arith.constant 0 : index
    %c0_0 = arith.constant 0 : index
    %0 = vector.load %arg1[%c0, %c0_0] : memref<8x64xf32, #tpu.memory_space<vmem>>, vector<8x64xf32>
    %1 = arith.truncf %0 : vector<8x64xf32> to vector<8x64xbf16>
    %c0_1 = arith.constant 0 : index
    %c0_2 = arith.constant 0 : index
    %2 = vector.load %arg2[%c0_1, %c0_2] : memref<64x48xbf16, #tpu.memory_space<vmem>>, vector<64x48xbf16>
    %cst = arith.constant dense<0.000000e+00> : vector<8x48xf32>
    %3 = tpu.matmul %1, %2, %cst {dimension_numbers = #tpu.dot_dimension_numbers<[1], [0], [0], [1], [0, 0, 1, 1], [], []>} : vector<8x64xbf16>, vector<64x48xbf16>, vector<8x48xf32> -> vector<8x48xf32>
    %c0_3 = arith.constant 0 : index
    %c0_4 = arith.constant 0 : index
    %4 = vector.load %arg3[%c0_3, %c0_4] : memref<1x48xf32, #tpu.memory_space<vmem>>, vector<1x48xf32>
    %5 = vector.broadcast %4 : vector<1x48xf32> to vector<8x48xf32>
    %6 = arith.addf %3, %5 : vector<8x48xf32>
    %cst_5 = arith.constant 0.000000e+00 : f32
    %7 = vector.broadcast %cst_5 : f32 to vector<8x48xf32>
    %8 = arith.maximumf %6, %7 : vector<8x48xf32>
    %9 = arith.truncf %8 : vector<8x48xf32> to vector<8x48xbf16>
    %c0_6 = arith.constant 0 : index
    %c0_7 = arith.constant 0 : index
    %10 = vector.load %arg4[%c0_6, %c0_7] : memref<48x32xbf16, #tpu.memory_space<vmem>>, vector<48x32xbf16>
    %cst_8 = arith.constant dense<0.000000e+00> : vector<8x32xf32>
    %11 = tpu.matmul %9, %10, %cst_8 {dimension_numbers = #tpu.dot_dimension_numbers<[1], [0], [0], [1], [0, 0, 1, 1], [], []>} : vector<8x48xbf16>, vector<48x32xbf16>, vector<8x32xf32> -> vector<8x32xf32>
    %c0_9 = arith.constant 0 : index
    %c0_10 = arith.constant 0 : index
    %12 = vector.load %arg5[%c0_9, %c0_10] : memref<1x32xf32, #tpu.memory_space<vmem>>, vector<1x32xf32>
    %13 = vector.broadcast %12 : vector<1x32xf32> to vector<8x32xf32>
    %14 = arith.addf %11, %13 : vector<8x32xf32>
    %cst_11 = arith.constant 0.000000e+00 : f32
    %15 = vector.broadcast %cst_11 : f32 to vector<8x32xf32>
    %16 = arith.maximumf %14, %15 : vector<8x32xf32>
    %17 = arith.truncf %16 : vector<8x32xf32> to vector<8x32xbf16>
    %c0_12 = arith.constant 0 : index
    %c0_13 = arith.constant 0 : index
    %18 = vector.load %arg6[%c0_12, %c0_13] : memref<32x16xbf16, #tpu.memory_space<vmem>>, vector<32x16xbf16>
    %cst_14 = arith.constant dense<0.000000e+00> : vector<8x16xf32>
    %19 = tpu.matmul %17, %18, %cst_14 {dimension_numbers = #tpu.dot_dimension_numbers<[1], [0], [0], [1], [0, 0, 1, 1], [], []>} : vector<8x32xbf16>, vector<32x16xbf16>, vector<8x16xf32> -> vector<8x16xf32>
    %c0_15 = arith.constant 0 : index
    %c0_16 = arith.constant 0 : index
    %20 = vector.load %arg7[%c0_15, %c0_16] : memref<1x16xf32, #tpu.memory_space<vmem>>, vector<1x16xf32>
    %21 = vector.broadcast %20 : vector<1x16xf32> to vector<8x16xf32>
    %22 = arith.addf %19, %21 : vector<8x16xf32>
    %cst_17 = arith.constant 0.000000e+00 : f32
    %23 = vector.broadcast %cst_17 : f32 to vector<8x16xf32>
    %24 = arith.maximumf %22, %23 : vector<8x16xf32>
    %25 = arith.truncf %24 : vector<8x16xf32> to vector<8x16xbf16>
    %c0_18 = arith.constant 0 : index
    %c0_19 = arith.constant 0 : index
    %26 = vector.load %arg8[%c0_18, %c0_19] : memref<16x160xbf16, #tpu.memory_space<vmem>>, vector<16x160xbf16>
    %cst_20 = arith.constant dense<0.000000e+00> : vector<8x160xf32>
    %27 = tpu.matmul %25, %26, %cst_20 {dimension_numbers = #tpu.dot_dimension_numbers<[1], [0], [0], [1], [0, 0, 1, 1], [], []>} : vector<8x16xbf16>, vector<16x160xbf16>, vector<8x160xf32> -> vector<8x160xf32>
    %c0_21 = arith.constant 0 : index
    %c0_22 = arith.constant 0 : index
    %28 = vector.load %arg9[%c0_21, %c0_22] : memref<1x160xf32, #tpu.memory_space<vmem>>, vector<1x160xf32>
    %29 = vector.broadcast %28 : vector<1x160xf32> to vector<8x160xf32>
    %30 = arith.addf %27, %29 : vector<8x160xf32>
    %31 = vector.extract_strided_slice %30 {offsets = [0, 0], sizes = [8, 128], strides = [1, 1]} : vector<8x160xf32> to vector<8x128xf32>
    %c0_23 = arith.constant 0 : index
    %c0_24 = arith.constant 0 : index
    %32 = vector.load %arg15[%c0_23, %c0_24] : memref<8x128xf32, #tpu.memory_space<vmem>>, vector<8x128xf32>
    tpu.vector_store %arg15[%c0_23, %c0_24], %31 {strides = array<i32>} : memref<8x128xf32, #tpu.memory_space<vmem>>, vector<8x128xf32>,
    %33 = vector.extract_strided_slice %30 {offsets = [0, 128], sizes = [8, 32], strides = [1, 1]} : vector<8x160xf32> to vector<8x32xf32>
    %cst_25 = arith.constant 0.000000e+00 : f32
    %34 = vector.broadcast %cst_25 : f32 to vector<8x32xf32>
    %35 = arith.maximumf %33, %34 : vector<8x32xf32>
    %36 = arith.truncf %35 : vector<8x32xf32> to vector<8x32xbf16>
    %c0_26 = arith.constant 0 : index
    %c0_27 = arith.constant 0 : index
    %37 = vector.load %arg10[%c0_26, %c0_27] : memref<32x48xbf16, #tpu.memory_space<vmem>>, vector<32x48xbf16>
    %cst_28 = arith.constant dense<0.000000e+00> : vector<8x48xf32>
    %38 = tpu.matmul %36, %37, %cst_28 {dimension_numbers = #tpu.dot_dimension_numbers<[1], [0], [0], [1], [0, 0, 1, 1], [], []>} : vector<8x32xbf16>, vector<32x48xbf16>, vector<8x48xf32> -> vector<8x48xf32>
    %c0_29 = arith.constant 0 : index
    %c0_30 = arith.constant 0 : index
    %39 = vector.load %arg11[%c0_29, %c0_30] : memref<1x48xf32, #tpu.memory_space<vmem>>, vector<1x48xf32>
    %40 = vector.broadcast %39 : vector<1x48xf32> to vector<8x48xf32>
    %41 = arith.addf %38, %40 : vector<8x48xf32>
    %cst_31 = arith.constant 0.000000e+00 : f32
    %42 = vector.broadcast %cst_31 : f32 to vector<8x48xf32>
    %43 = arith.maximumf %41, %42 : vector<8x48xf32>
    %44 = arith.truncf %43 : vector<8x48xf32> to vector<8x48xbf16>
    %c0_32 = arith.constant 0 : index
    %c0_33 = arith.constant 0 : index
    %45 = vector.load %arg12[%c0_32, %c0_33] : memref<48x64xbf16, #tpu.memory_space<vmem>>, vector<48x64xbf16>
    %cst_34 = arith.constant dense<0.000000e+00> : vector<8x64xf32>
    %46 = tpu.matmul %44, %45, %cst_34 {dimension_numbers = #tpu.dot_dimension_numbers<[1], [0], [0], [1], [0, 0, 1, 1], [], []>} : vector<8x48xbf16>, vector<48x64xbf16>, vector<8x64xf32> -> vector<8x64xf32>
    %c0_35 = arith.constant 0 : index
    %c0_36 = arith.constant 0 : index
    %47 = vector.load %arg13[%c0_35, %c0_36] : memref<1x64xf32, #tpu.memory_space<vmem>>, vector<1x64xf32>
    %48 = vector.broadcast %47 : vector<1x64xf32> to vector<8x64xf32>
    %49 = arith.addf %46, %48 : vector<8x64xf32>
    %50 = arith.negf %49 : vector<8x64xf32>
    %51 = math.exp %50 : vector<8x64xf32>
    %cst_37 = arith.constant 1.000000e+00 : f32
    %52 = vector.broadcast %cst_37 : f32 to vector<8x64xf32>
    %53 = arith.addf %52, %51 : vector<8x64xf32>
    %54 = arith.divf %52, %53 : vector<8x64xf32>
    %c0_38 = arith.constant 0 : index
    %c0_39 = arith.constant 0 : index
    %55 = vector.load %arg14[%c0_38, %c0_39] : memref<8x64xf32, #tpu.memory_space<vmem>>, vector<8x64xf32>
    tpu.vector_store %arg14[%c0_38, %c0_39], %54 {strides = array<i32>} : memref<8x64xf32, #tpu.memory_space<vmem>>, vector<8x64xf32>,
    return
  }
  func.func @transform_0(%arg0: i32) -> (i32, i32) {
    %c0_i32 = arith.constant 0 : i32
    %c0_i32_0 = arith.constant 0 : i32
    return %arg0, %c0_i32 : i32, i32
  }
  func.func @transform_1(%arg0: i32) -> (i32, i32) {
    %c0_i32 = arith.constant 0 : i32
    %c0_i32_0 = arith.constant 0 : i32
    %c0_i32_1 = arith.constant 0 : i32
    return %c0_i32, %c0_i32_0 : i32, i32
  }
  func.func @transform_2(%arg0: i32) -> (i32, i32) {
    %c0_i32 = arith.constant 0 : i32
    %c0_i32_0 = arith.constant 0 : i32
    %c0_i32_1 = arith.constant 0 : i32
    return %c0_i32, %c0_i32_0 : i32, i32
  }
  func.func @transform_3(%arg0: i32) -> (i32, i32) {
    %c0_i32 = arith.constant 0 : i32
    %c0_i32_0 = arith.constant 0 : i32
    %c0_i32_1 = arith.constant 0 : i32
    return %c0_i32, %c0_i32_0 : i32, i32
  }
  func.func @transform_4(%arg0: i32) -> (i32, i32) {
    %c0_i32 = arith.constant 0 : i32
    %c0_i32_0 = arith.constant 0 : i32
    %c0_i32_1 = arith.constant 0 : i32
    return %c0_i32, %c0_i32_0 : i32, i32
  }
  func.func @transform_5(%arg0: i32) -> (i32, i32) {
    %c0_i32 = arith.constant 0 : i32
    %c0_i32_0 = arith.constant 0 : i32
    %c0_i32_1 = arith.constant 0 : i32
    return %c0_i32, %c0_i32_0 : i32, i32
  }
  func.func @transform_6(%arg0: i32) -> (i32, i32) {
    %c0_i32 = arith.constant 0 : i32
    %c0_i32_0 = arith.constant 0 : i32
    %c0_i32_1 = arith.constant 0 : i32
    return %c0_i32, %c0_i32_0 : i32, i32
  }
  func.func @transform_7(%arg0: i32) -> (i32, i32) {
    %c0_i32 = arith.constant 0 : i32
    %c0_i32_0 = arith.constant 0 : i32
    %c0_i32_1 = arith.constant 0 : i32
    return %c0_i32, %c0_i32_0 : i32, i32
  }
  func.func @transform_8(%arg0: i32) -> (i32, i32) {
    %c0_i32 = arith.constant 0 : i32
    %c0_i32_0 = arith.constant 0 : i32
    %c0_i32_1 = arith.constant 0 : i32
    return %c0_i32, %c0_i32_0 : i32, i32
  }
  func.func @transform_9(%arg0: i32) -> (i32, i32) {
    %c0_i32 = arith.constant 0 : i32
    %c0_i32_0 = arith.constant 0 : i32
    %c0_i32_1 = arith.constant 0 : i32
    return %c0_i32, %c0_i32_0 : i32, i32
  }
  func.func @transform_10(%arg0: i32) -> (i32, i32) {
    %c0_i32 = arith.constant 0 : i32
    %c0_i32_0 = arith.constant 0 : i32
    %c0_i32_1 = arith.constant 0 : i32
    return %c0_i32, %c0_i32_0 : i32, i32
  }
  func.func @transform_11(%arg0: i32) -> (i32, i32) {
    %c0_i32 = arith.constant 0 : i32
    %c0_i32_0 = arith.constant 0 : i32
    %c0_i32_1 = arith.constant 0 : i32
    return %c0_i32, %c0_i32_0 : i32, i32
  }
  func.func @transform_12(%arg0: i32) -> (i32, i32) {
    %c0_i32 = arith.constant 0 : i32
    %c0_i32_0 = arith.constant 0 : i32
    %c0_i32_1 = arith.constant 0 : i32
    return %c0_i32, %c0_i32_0 : i32, i32
  }
  func.func @transform_13(%arg0: i32) -> (i32, i32) {
    %c0_i32 = arith.constant 0 : i32
    %c0_i32_0 = arith.constant 0 : i32
    return %arg0, %c0_i32 : i32, i32
  }
  func.func @transform_14(%arg0: i32) -> (i32, i32) {
    %c0_i32 = arith.constant 0 : i32
    %c0_i32_0 = arith.constant 0 : i32
    return %arg0, %c0_i32 : i32, i32
  }
}

</mosaic_0001>

<bundles_post_ra>
// kernel: autoencoder_forward.1
= control target key start
LH: loop header
LB: loop body
LE: loop exit
PB: predicated region body
PF: predicated region fallthrough
CT: control target
= control target key end

     0   :  { %20 = vsyncpa [#allocation3], 0  ;;  %v700_v1 = vmov 0.0   ;;  %vm701_vm0 = vmmov 0   ;;  %s903_s0 = inlined_call_operand.vmem [shape: f32[8,64], index: 0, kind: input, shape index: {}]   ;;  %s904_s1 = inlined_call_operand.vmem [shape: bf16[64,48], index: 1, kind: input, shape index: {}]   ;;  %s905_s2 = inlined_call_operand.vmem [shape: f32[1,48], index: 2, kind: input, shape index: {}]   ;;  %s906_s3 = inlined_call_operand.vmem [shape: bf16[48,32], index: 3, kind: input, shape index: {}]   ;;  %s907_s4 = inlined_call_operand.vmem [shape: f32[1,32], index: 4, kind: input, shape index: {}]   ;;  %s908_s5 = inlined_call_operand.vmem [shape: bf16[32,16], index: 5, kind: input, shape index: {}]   ;;  %s909_s6 = inlined_call_operand.vmem [shape: f32[1,16], index: 6, kind: input, shape index: {}]   ;;  %s910_s7 = inlined_call_operand.vmem [shape: bf16[16,160], index: 7, kind: input, shape index: {}]   ;;  %s911_s8 = inlined_call_operand.vmem [shape: f32[1,160], index: 8, kind: input, shape index: {}]   ;;  %s912_s9 = inlined_call_operand.vmem [shape: bf16[32,48], index: 9, kind: input, shape index: {}]   ;;  %s913_s10 = inlined_call_operand.vmem [shape: f32[1,48], index: 10, kind: input, shape index: {}]   ;;  %s914_s11 = inlined_call_operand.vmem [shape: bf16[48,64], index: 11, kind: input, shape index: {}]   ;;  %s915_s12 = inlined_call_operand.vmem [shape: f32[1,64], index: 12, kind: input, shape index: {}]   ;;  %s916_s13 = inlined_call_operand.hbm [shape: f32[8,64], index: 13, kind: output, shape index: {0}]   ;;  %s917_s14 = inlined_call_operand.hbm [shape: f32[8,128], index: 14, kind: output, shape index: {1}]  }
   0x1   :  { %v631_v0 = vld [vmem:[%s904_s1] sm:$0xff]   ;;  %578 = vmatprep.subr.bf16.mxu0 %v700_v1  ;;  %590 = vmatprep.subr.bf16.mxu1 %v700_v1  ;;  %v632_v2 = vld [vmem:[%s904_s1 + $0x8] sm:$0xff]   ;;  %v633_v3 = vld [vmem:[%s904_s1 + $0x10] sm:$0xff]  }
   0x2   :  { %579 = vmatpush3.bf16.msra.mxu0 %v631_v0  ;;  %586 = vmatprep.mubr.msk.bf16.mxu0 %vm701_vm0, %v700_v1  ;;  %v635_v4 = vld [vmem:[%s906_s3] sm:$0xff]   ;;  %v634_v5 = vld [vmem:[%s904_s1 + $0x18] sm:$0xff]  }
   0x3   :  { %580 = vmatprep.subr.bf16.mxu0 %v700_v1  ;;  %596 = vmatprep.mubr.msk.bf16.mxu1 %vm701_vm0, %v700_v1  ;;  %v49_v6 = vld [vmem:[%s903_s0] sm:$0xff] }
   0x4   :  { %591 = vmatpush3.bf16.msra.mxu1 %v635_v4 }
   0x5   :  { %592 = vmatprep.subr.bf16.mxu1 %v700_v1 }
   0x6   :  { %581 = vmatpush3.bf16.msra.mxu0 %v632_v2 }
   0x7   :  { %582 = vmatprep.subr.bf16.mxu0 %v700_v1 }
   0xa   :  { %583 = vmatpush3.bf16.msra.mxu0 %v633_v3 }
   0xb   :  { %584 = vmatprep.subr.bf16.mxu0 %v700_v1 }
   0xc   :  { %21 = vsyncpa [#allocation5], 0  ;;  %v50_v7 = vpack.c.bf16 %v49_v6, %v49_v6  ;;  %vm90_vm1 = vcmask 523264   ;;  %v636_v8 = vld [vmem:[%s906_s3 + $0x8] sm:$0xff]   ;;  %v637_v9 = vld [vmem:[%s906_s3 + $0x10] sm:$0xff]   ;;  %vm167_vm2 = vcmask 392192   ;;  %v286_v42 = vlaneseq }
   0xd   :  { %593 = vmatpush3.bf16.msra.mxu1 %v636_v8  ;;  %v531_v10 = vld [vmem:[%s905_s2] ss:$0 sm:$0xff]  ;;  %v639_v19 = vld [vmem:[%s908_s5 + $0x8] sm:$0xff]   ;;  %vm236_vm3 = vcmask 261120   ;;  %v702_v30 = vmov 0   ;;  %vm306_vm4 = vcmask 130048  }
   0xe   :  { %585 = vmatpush3.bf16.msra.mxu0 %v634_v5  ;;  %594 = vmatprep.subr.bf16.mxu1 %v700_v1  ;;  %v638_v17 = vld [vmem:[%s908_s5] sm:$0xff]   ;;  %v644_v40 = vld [vmem:[%s912_s9 + $0x8] sm:$0xff]   ;;  %v287_v43 = vshrl.u32 %v286_v42, 7  ;;  %v647_v58 = vld [vmem:[%s914_s11 + $0x10] sm:$0xff]   ;;  %s703_s29 = smov [#allocation4]  }
   0xf   :  { %v640_v20 = vld [vmem:[%s910_s7] ss:$8 sps:$4 sm:$0xff]   ;;  %v642_v21 = vld [vmem:[%s910_s7 + $0x4] ss:$8 sps:$4 sm:$0xff]   ;;  %s519_s30 = sshll.u32 %s703_s29, 4  ;;  %s520_s30 = int_to_ptr.vmem [resolvable:$true] %s519_s30 }
  0x10   :  { %310 = vmatprep.subr.bf16.mxu0 %v642_v21  ;;  %v537_v22 = vld [vmem:[%s907_s4] ss:$0 sm:$0xff]  ;;  %v288_v44 = vsub.s32 0, %v287_v43  ;;  %v292_v46 = vsub.s32 1, %v287_v43  ;;  %v646_v57 = vld [vmem:[%s914_s11 + $0x8] sm:$0xff]   ;;  %s652_s2 = scalar_lea.vmem %s520_s30, 128  ;;  %p657_p1 = scmp.lt.s32.totalorder %s520_s30, %s520_s30 }
  0x11   :  { %587 = vmatmul.mubr.msk.bf16.vlgmr.msra.gmra.mrb[0].mxu0 %vm90_vm1, %v50_v7  ;;  %595 = vmatpush3.bf16.msra.mxu1 %v637_v9  ;;  %v542_v31 = vld [vmem:[%s909_s6] ss:$0 sm:$0xff]  ;;  %p653_p0 = scmp.ne.s32.totalorder %s520_s30, %s652_s2  ;;  %p658_p2 = scmp.lt.s32.totalorder %s652_s2, %s652_s2 }
  0x12   :  { %600 = vmatprep.subr.bf16.mxu1 %v700_v1  ;;  %311 = vmatpush1.bf16.msra.mxu0 %v640_v20  ;;  %v643_v39 = vld [vmem:[%s912_s9] sm:$0xff]  }
  0x13   :  { %616 = vmatprep.subr.bf16.mxu0 %v700_v1  ;;  %342 = vmatprep.mubr.bf16.mxu0 %v702_v30  ;;  %v645_v41 = vld [vmem:[%s914_s11] sm:$0xff]   ;;  %p659_p3 = por %p658_p2, %p657_p1 }
  0x14   :  { %v284_v45 = vld [vmem:[%s911_s8] sm:$0x3] }
  0x15   :  { %v289_v47 = vrot.slane %v284_v45, %v288_v44  ;;  %v293_v48 = vrot.slane %v284_v45, %v292_v46  ;;  %v549_v59 = vld [vmem:[%s913_s10] ss:$0 sm:$0xff]  ;;  %p660_p4 = pnand %p659_p3, %p653_p0 }
  0xe4   :  { %v128_v11 = vpop.f32.mrb[0].mxu0 }
  0xe5   :  { %v129_v12 = vadd.f32 %v531_v10, %v128_v11  ;;  %v588_v13 = vpop.f32.mrb[1].mxu0 }
  0xe6   :  { %v131_v14 = vpop.f32.mrb[2].mxu0 }
  0xe7   :  { %v134_v15 = vmax.f32 %v129_v12, 0.0  ;;  %v589_v16 = vpop.f32.mrb[3].mxu0 }
  0xe9   :  { %v135_v18 = vpack.c.bf16 %v134_v15, %v134_v15 }
  0xeb   :  { %597 = vmatmul.mubr.msk.bf16.vlgmr.msra.gmra.mrb[0].mxu1 %vm167_vm2, %v135_v18 }
  0xec   :  { %601 = vmatpush3.bf16.msra.mxu1 %v638_v17  ;;  %604 = vmatprep.mubr.msk.bf16.mxu1 %vm701_vm0, %v700_v1 }
  0xed   :  { %602 = vmatprep.subr.bf16.mxu1 %v700_v1 }
  0xf0   :  { %603 = vmatpush3.bf16.msra.mxu1 %v639_v19 }
  0xf1   :  { %608 = vmatprep.subr.bf16.mxu1 %v700_v1 }
 0x1be   :  { %v205_v23 = vpop.f32.mrb[0].mxu1 }
 0x1bf   :  { %v206_v24 = vadd.f32 %v537_v22, %v205_v23  ;;  %v598_v25 = vpop.f32.mrb[1].mxu1 }
 0x1c0   :  { %v208_v26 = vpop.f32.mrb[2].mxu1 }
 0x1c1   :  { %v211_v27 = vmax.f32 %v206_v24, 0.0  ;;  %v599_v28 = vpop.f32.mrb[3].mxu1 }
 0x1c3   :  { %v212_v29 = vpack.c.bf16 %v211_v27, %v211_v27 }
 0x1c5   :  { %605 = vmatmul.mubr.msk.bf16.vlgmr.msra.gmra.mrb[4].mxu1 %vm236_vm3, %v212_v29 }
 0x1c6   :  { %612 = vmatprep.mubr.msk.bf16.mxu1 %vm701_vm0, %v700_v1  ;;  %609 = vmatpush3.bf16.msra.mxu1 %v643_v39 }
 0x1c7   :  { %610 = vmatprep.subr.bf16.mxu1 %v700_v1 }
 0x1ca   :  { %611 = vmatpush3.bf16.msra.mxu1 %v644_v40 }
 0x298   :  { %v274_v32 = vpop.f32.mrb[4].mxu1 }
 0x299   :  { %v275_v33 = vadd.f32 %v542_v31, %v274_v32  ;;  %v606_v34 = vpop.f32.mrb[5].mxu1 }
 0x29a   :  { %v277_v35 = vpop.f32.mrb[6].mxu1 }
 0x29b   :  { %v280_v36 = vmax.f32 %v275_v33, 0.0  ;;  %v607_v37 = vpop.f32.mrb[7].mxu1 }
 0x29d   :  { %v281_v38 = vpack.c.bf16 %v280_v36, %v280_v36 }
 0x29f   :  { %548 = vmatmul.mubr.msk.bf16.vlgmr.msra.gmra.mrb[4].mxu0 %vm306_vm4, %v281_v38 }
 0x2a0   :  { %622 = vmatprep.mubr.msk.bf16.mxu0 %vm701_vm0, %v700_v1  ;;  %617 = vmatpush3.bf16.msra.mxu0 %v645_v41 }
 0x2a1   :  { %618 = vmatprep.subr.bf16.mxu0 %v700_v1 }
 0x2a4   :  { %619 = vmatpush3.bf16.msra.mxu0 %v646_v57 }
 0x2a5   :  { %620 = vmatprep.subr.bf16.mxu0 %v700_v1 }
 0x2a8   :  { %621 = vmatpush3.bf16.msra.mxu0 %v647_v58 }
 0x372   :  { %v344_v49 = vpop.f32.mrb[4].mxu0 }
 0x373   :  { %v345_v50 = vadd.f32 %v344_v49, %v289_v47  ;;  %v346_v51 = vpop.f32.mrb[5].mxu0 }
 0x374   :  { %v347_v52 = vadd.f32 %v346_v51, %v293_v48  ;;  %v348_v53 = vpop.f32.mrb[6].mxu0 }
 0x375   :  { %351 = vst [vmem:[#allocation4] sm:$0xff] %v345_v50  ;;  %v349_v54 = vpop.f32.mrb[7].mxu0 }
 0x376   :  { %v352_v55 = vmax.f32 %v347_v52, 0.0 }
 0x378   :  { %v353_v56 = vpack.c.bf16 %v352_v55, %v352_v55 }
 0x37a   :  { %613 = vmatmul.mubr.msk.bf16.vlgmr.msra.gmra.mrb[8].mxu1 %vm236_vm3, %v353_v56 }
 0x44d   :  { %v414_v60 = vpop.f32.mrb[8].mxu1 }
 0x44e   :  { %v415_v61 = vadd.f32 %v549_v59, %v414_v60  ;;  %v614_v62 = vpop.f32.mrb[9].mxu1 }
 0x44f   :  { %v417_v63 = vpop.f32.mrb[10].mxu1 }
 0x450   :  { %v420_v0 = vmax.f32 %v415_v61, 0.0  ;;  %v615_v2 = vpop.f32.mrb[11].mxu1 }
 0x452   :  { %v421_v3 = vpack.c.bf16 %v420_v0, %v420_v0 }
 0x454   :  { %623 = vmatmul.mubr.msk.bf16.vlgmr.msra.gmra.mrb[8].mxu0 %vm167_vm2, %v421_v3 }
 0x455   :  { %663 = shalt.err (!%p660_p4)
}
 0x456   :  { %s664_s3 = scalar_lea.hbm %s917_s14, 128 }
 0x457   :  { %p665_p5 = scmp.ne.s32.totalorder %s917_s14, %s664_s3  ;;  %p668_p6 = scmp.lt.u32.totalorder %s664_s3, %s917_s14 }
 0x459   :  { %p670_p7 = pnand %p668_p6, %p665_p5 }
 0x45b   :  { %673 = shalt.err (!%p670_p7)
}
 0x45c   :  { %522 = dma.vmem_to_hbm [thread:$0]  %s520_s30, 128, %s917_s14, [#allocation5]   ;;  %v553_v1 = vld [vmem:[%s915_s12] ss:$0 sm:$0xff] }
 0x45d   :  { %s704_s4 = smov [#allocation2]  }
 0x45e   :  { %s509_s21 = sshll.u32 %s704_s4, 4  ;;  %s510_s21 = int_to_ptr.vmem [resolvable:$true] %s509_s21 }
 0x45f   :  { %s674_s14 = scalar_lea.vmem %s510_s21, 128  ;;  %p679_p9 = scmp.lt.s32.totalorder %s510_s21, %s510_s21 }
 0x460   :  { %p675_p8 = scmp.ne.s32.totalorder %s510_s21, %s674_s14  ;;  %p680_p10 = scmp.lt.s32.totalorder %s674_s14, %s674_s14 }
 0x462   :  { %p681_p11 = por %p680_p10, %p679_p9 }
 0x464   :  { %p682_p12 = pnand %p681_p11, %p675_p8 }
 0x527   :  { %v490_v4 = vpop.f32.mrb[8].mxu0 }
 0x528   :  { %v491_v5 = vadd.f32 %v553_v1, %v490_v4  ;;  %v624_v6 = vpop.f32.mrb[9].mxu0 }
 0x529   :  { %v493_v7 = vpop.f32.mrb[10].mxu0 }
 0x52a   :  { %v558_v8 = vmul.f32 -1.442695, %v491_v5  ;;  %v625_v9 = vpop.f32.mrb[11].mxu0 }
 0x52c   :  { %648 = vpow2.f32 %v558_v8 }
 0x536   :  { %v649_v10 = vpop.eup %648 }
 0x537   :  { %v499_v11 = vadd.f32 1.0, %v649_v10 }
 0x539   :  { %650 = vrcp.f32 %v499_v11 }
 0x543   :  { %v651_v12 = vpop.eup %650 }
 0x544   :  { %502 = vst.msk [vmem:[#allocation2] sm:$0xff] %vm90_vm1, %v651_v12 }
 0x545   :  { %685 = shalt.err (!%p682_p12)
}
 0x546   :  { %s686_s22 = scalar_lea.hbm %s916_s13, 128 }
 0x547   :  { %p687_p13 = scmp.ne.s32.totalorder %s916_s13, %s686_s22  ;;  %p690_p0 = scmp.lt.u32.totalorder %s686_s22, %s916_s13 }
 0x549   :  { %p692_p1 = pnand %p690_p0, %p687_p13 }
 0x54b   :  { %695 = shalt.err (!%p692_p1)
}
 0x54c   :  { %512 = dma.vmem_to_hbm [thread:$0]  %s510_s21, 128, %s916_s13, [#allocation3]  }
 0x54d   :  { %696 = dma.done.wait [#allocation3], 128  }
 0x54e   :  { %697 = vsyncadd [#allocation3], 4294967168 }
 0x54f   :  { %698 = dma.done.wait [#allocation5], 128  }
 0x550   :  { %699 = vsyncadd [#allocation5], 4294967168 }
 0x551   :  { %529 = vsyncpa [#allocation3], 1 }
 0x552   :  { %530 = vsyncpa [#allocation5], 1 }

</bundles_post_ra>
